<compile_context>
chip_gen: v6e
topology: v6e:2x2x1
jax: 0.10.0
libtpu: 0.0.40
codegen_flags: <defaults>
</compile_context>

<pallas_src>
import jax
import jax.numpy as jnp
from jax.experimental import pallas as pl
from jax.experimental.pallas import tpu as pltpu


def residual_linear_kernel(x_lhs_ref, w_ref, b_ref, x_res_ref, o_ref, acc_ref):
    # x_lhs_ref: (tm, tk) activation K-tile   (LHS of the matmul)
    # w_ref:     (tk, tn) weight tile          (streamed over the grid)
    # b_ref:     (1, tn)  bias tile
    # x_res_ref: (tm, tn) activation N-tile    (residual term)
    # o_ref:     (tm, tn) output tile
    # acc_ref:   (tm, tn) f32 accumulator scratch (persists across the K axis)
    k = pl.program_id(2)

    @pl.when(k == 0)
    def _():
        acc_ref[...] = jnp.zeros_like(acc_ref)

    acc_ref[...] += jnp.dot(x_lhs_ref[...], w_ref[...],
                            preferred_element_type=jnp.float32)

    @pl.when(k == pl.num_programs(2) - 1)
    def _():
        y = (acc_ref[...]
             + b_ref[...].astype(jnp.float32)
             + x_res_ref[...].astype(jnp.float32))
        o_ref[...] = y.astype(o_ref.dtype)


def _vmem_capacity_bytes():
    try:
        return int(pltpu.get_tpu_info().vmem_capacity_bytes)
    except Exception:
        return 64 * 1024 * 1024  # conservative: v7x per-TC VMEM


def _vmem_estimate(tm, tn, tk, x_dtype, w_dtype, b_dtype, o_dtype):
    isz = jnp.dtype(x_dtype).itemsize
    wsz = jnp.dtype(w_dtype).itemsize
    bsz = jnp.dtype(b_dtype).itemsize
    osz = jnp.dtype(o_dtype).itemsize
    return (2 * tm * tk * isz        # x LHS tile, double-buffered
            + 2 * tk * tn * wsz      # weight tile, double-buffered
            + 2 * 8 * tn * bsz       # bias tile (sublane-padded), double-buffered
            + 2 * tm * tn * isz      # x residual tile, double-buffered
            + 2 * tm * tn * osz      # output tile, double-buffered
            + tm * tn * 4            # f32 accumulator scratch
            + tm * tn * 4)           # internal f32 matmul temp


def residual_linear(x, w, b, *, tm=None, tn=None, tk=None, vmem_limit_bytes=None):
    """x: (B, S, H), w: (H, H), b: (H,) -> (B, S, H) = x + (x @ W + b)."""
    B, S, H = x.shape
    M = B * S
    x2 = x.reshape(M, H)
    b2 = b.reshape(1, H)

    vmem_cap = _vmem_capacity_bytes()

    # N (output-column) and K (contraction) tiles: MXU-aligned multiples of
    # 128/256 when H allows; otherwise the full dim (always layout-legal).
    if tn is None:
        tn = 256 if H % 256 == 0 else (128 if H % 128 == 0 else H)
    if tk is None:
        if H % 512 == 0:
            tk = 512
        elif H % 256 == 0:
            tk = 256
        elif H % 128 == 0:
            tk = 128
        else:
            tk = H

    # Row tile: bigger on 128 MiB parts (v5e/v6e) to amortize the ~0.35 us
    # per-step overhead, smaller on 64 MiB parts (v7x).
    if tm is None:
        tm = 512 if vmem_cap >= 100 * 1024 * 1024 else 256
    tm = min(tm, M)
    if tm != M:
        tm = max(8, (tm // 8) * 8)

    # Shrink tm until the double-buffered pipeline fits the device budget.
    budget = vmem_cap - 8 * 1024 * 1024
    est = _vmem_estimate(tm, tn, tk, x.dtype, w.dtype, b.dtype, x.dtype)
    while est > budget and tm > 8:
        tm = max(8, ((tm // 2) // 8) * 8)
        est = _vmem_estimate(tm, tn, tk, x.dtype, w.dtype, b.dtype, x.dtype)

    if vmem_limit_bytes is None:
        # Raise the scoped limit whenever the estimate exceeds the smallest
        # per-generation default (16 MiB on v5e); cap below device capacity.
        want = int(est * 3 // 2)
        if want > 16 * 1024 * 1024:
            vmem_limit_bytes = min(want, vmem_cap - 4 * 1024 * 1024)

    grid = (pl.cdiv(M, tm), pl.cdiv(H, tn), pl.cdiv(H, tk))

    out = pl.pallas_call(
        residual_linear_kernel,
        out_shape=jax.ShapeDtypeStruct((M, H), x.dtype),
        grid_spec=pltpu.PrefetchScalarGridSpec(
            num_scalar_prefetch=0,
            grid=grid,
            in_specs=[
                pl.BlockSpec((tm, tk), lambda i, j, k: (i, k)),   # x as LHS
                pl.BlockSpec((tk, tn), lambda i, j, k: (k, j)),   # weight tile
                pl.BlockSpec((1, tn), lambda i, j, k: (0, j)),    # bias tile
                pl.BlockSpec((tm, tn), lambda i, j, k: (i, j)),   # x as residual
            ],
            out_specs=pl.BlockSpec((tm, tn), lambda i, j, k: (i, j)),
            scratch_shapes=[pltpu.VMEM((tm, tn), jnp.float32)],
        ),
        compiler_params=pltpu.CompilerParams(
            dimension_semantics=("parallel", "parallel", "arbitrary"),
            vmem_limit_bytes=vmem_limit_bytes,
        ),
    )(x2, w, b2, x2)
    return out.reshape(B, S, H)


if __name__ == "__main__":
    key = jax.random.PRNGKey(0)
    k_x, k_w, k_b = jax.random.split(key, 3)

    batch, seq, hidden = 2, 8, 32
    x = jax.random.normal(k_x, (batch, seq, hidden), dtype=jnp.float32)
    # Deterministic parameter init (kaiming-uniform-like scale for Linear).
    bound = 1.0 / (hidden ** 0.5)
    w = jax.random.uniform(k_w, (hidden, hidden), jnp.float32, -bound, bound)
    b = jax.random.uniform(k_b, (hidden,), jnp.float32, -bound, bound)

    out = residual_linear(x, w, b)
    jax.block_until_ready(out)

    # Reference check in plain JAX: x + (x @ W + b)
    ref = x + (jnp.einsum("bsh,hk->bsk", x, w) + b)
    assert jnp.allclose(out, ref, atol=1e-5, rtol=1e-5), "mismatch vs reference"

    print("KERNEL_OK")
</pallas_src>

<mosaic_0001>
module attributes {stable_mosaic.version = 11 : i64} {
  func.func @residual_linear_kernel(%arg0: i32, %arg1: i32, %arg2: i32, %arg3: memref<16x32xf32, #tpu.memory_space<vmem>>, %arg4: memref<32x32xf32, #tpu.memory_space<vmem>>, %arg5: memref<1x32xf32, #tpu.memory_space<vmem>>, %arg6: memref<16x32xf32, #tpu.memory_space<vmem>>, %arg7: memref<16x32xf32, #tpu.memory_space<vmem>>, %arg8: memref<16x32xf32, #tpu.memory_space<vmem>>) attributes {dimension_semantics = [#tpu.dimension_semantics<parallel>, #tpu.dimension_semantics<parallel>, #tpu.dimension_semantics<arbitrary>], iteration_bounds = array<i64: 1, 1, 1>, scalar_prefetch = 0 : i64, scratch_operands = 1 : i64, tpu.core_type = #tpu.core_type<tc>, window_params = [{transform_indices = @transform_0, window_bounds = array<i64: 16, 32>}, {transform_indices = @transform_1, window_bounds = array<i64: 32, 32>}, {transform_indices = @transform_2, window_bounds = array<i64: 1, 32>}, {transform_indices = @transform_3, window_bounds = array<i64: 16, 32>}, {transform_indices = @transform_4, window_bounds = array<i64: 16, 32>}]} {
    %c0_i32 = arith.constant 0 : i32
    %0 = arith.cmpi eq, %arg2, %c0_i32 : i32
    %1 = arith.extui %0 : i1 to i32
    %c0_i32_0 = arith.constant 0 : i32
    %2 = arith.cmpi ne, %1, %c0_i32_0 : i32
    scf.if %2 {
      %cst_10 = arith.constant 0.000000e+00 : f32
      %12 = vector.broadcast %cst_10 : f32 to vector<16x32xf32>
      %c0_11 = arith.constant 0 : index
      %c0_12 = arith.constant 0 : index
      %13 = vector.load %arg8[%c0_11, %c0_12] : memref<16x32xf32, #tpu.memory_space<vmem>>, vector<16x32xf32>
      tpu.vector_store %arg8[%c0_11, %c0_12], %12 {strides = array<i32>} : memref<16x32xf32, #tpu.memory_space<vmem>>, vector<16x32xf32>,
    } else {
    }
    %c0 = arith.constant 0 : index
    %c0_1 = arith.constant 0 : index
    %3 = vector.load %arg8[%c0, %c0_1] : memref<16x32xf32, #tpu.memory_space<vmem>>, vector<16x32xf32>
    %c0_2 = arith.constant 0 : index
    %c0_3 = arith.constant 0 : index
    %4 = vector.load %arg3[%c0_2, %c0_3] : memref<16x32xf32, #tpu.memory_space<vmem>>, vector<16x32xf32>
    %c0_4 = arith.constant 0 : index
    %c0_5 = arith.constant 0 : index
    %5 = vector.load %arg4[%c0_4, %c0_5] : memref<32x32xf32, #tpu.memory_space<vmem>>, vector<32x32xf32>
    %cst = arith.constant dense<0.000000e+00> : vector<16x32xf32>
    %6 = tpu.matmul %4, %5, %cst {dimension_numbers = #tpu.dot_dimension_numbers<[1], [0], [0], [1], [0, 0, 1, 1], [], []>} : vector<16x32xf32>, vector<32x32xf32>, vector<16x32xf32> -> vector<16x32xf32>
    %7 = arith.addf %3, %6 : vector<16x32xf32>
    %c0_6 = arith.constant 0 : index
    %c0_7 = arith.constant 0 : index
    %8 = vector.load %arg8[%c0_6, %c0_7] : memref<16x32xf32, #tpu.memory_space<vmem>>, vector<16x32xf32>
    tpu.vector_store %arg8[%c0_6, %c0_7], %7 {strides = array<i32>} : memref<16x32xf32, #tpu.memory_space<vmem>>, vector<16x32xf32>,
    %c0_i32_8 = arith.constant 0 : i32
    %9 = arith.cmpi eq, %arg2, %c0_i32_8 : i32
    %10 = arith.extui %9 : i1 to i32
    %c0_i32_9 = arith.constant 0 : i32
    %11 = arith.cmpi ne, %10, %c0_i32_9 : i32
    scf.if %11 {
      %c0_10 = arith.constant 0 : index
      %c0_11 = arith.constant 0 : index
      %12 = vector.load %arg8[%c0_10, %c0_11] : memref<16x32xf32, #tpu.memory_space<vmem>>, vector<16x32xf32>
      %c0_12 = arith.constant 0 : index
      %c0_13 = arith.constant 0 : index
      %13 = vector.load %arg5[%c0_12, %c0_13] : memref<1x32xf32, #tpu.memory_space<vmem>>, vector<1x32xf32>
      %14 = vector.broadcast %13 : vector<1x32xf32> to vector<16x32xf32>
      %15 = arith.addf %12, %14 : vector<16x32xf32>
      %c0_14 = arith.constant 0 : index
      %c0_15 = arith.constant 0 : index
      %16 = vector.load %arg6[%c0_14, %c0_15] : memref<16x32xf32, #tpu.memory_space<vmem>>, vector<16x32xf32>
      %17 = arith.addf %15, %16 : vector<16x32xf32>
      %c0_16 = arith.constant 0 : index
      %c0_17 = arith.constant 0 : index
      %18 = vector.load %arg7[%c0_16, %c0_17] : memref<16x32xf32, #tpu.memory_space<vmem>>, vector<16x32xf32>
      tpu.vector_store %arg7[%c0_16, %c0_17], %17 {strides = array<i32>} : memref<16x32xf32, #tpu.memory_space<vmem>>, vector<16x32xf32>,
    } else {
    }
    return
  }
  func.func @transform_0(%arg0: i32, %arg1: i32, %arg2: i32) -> (i32, i32) {
    %c0_i32 = arith.constant 0 : i32
    return %arg0, %arg2 : i32, i32
  }
  func.func @transform_1(%arg0: i32, %arg1: i32, %arg2: i32) -> (i32, i32) {
    %c0_i32 = arith.constant 0 : i32
    return %arg2, %arg1 : i32, i32
  }
  func.func @transform_2(%arg0: i32, %arg1: i32, %arg2: i32) -> (i32, i32) {
    %c0_i32 = arith.constant 0 : i32
    %c0_i32_0 = arith.constant 0 : i32
    return %c0_i32, %arg1 : i32, i32
  }
  func.func @transform_3(%arg0: i32, %arg1: i32, %arg2: i32) -> (i32, i32) {
    %c0_i32 = arith.constant 0 : i32
    return %arg0, %arg1 : i32, i32
  }
  func.func @transform_4(%arg0: i32, %arg1: i32, %arg2: i32) -> (i32, i32) {
    %c0_i32 = arith.constant 0 : i32
    return %arg0, %arg1 : i32, i32
  }
}

</mosaic_0001>

<bundles_post_ra>
// kernel: tpu_custom_call.1
= control target key start
LH: loop header
LB: loop body
LE: loop exit
PB: predicated region body
PF: predicated region fallthrough
CT: control target
= control target key end

     0   :  { %9 = vsyncpa [#allocation4], 0  ;;  %s378_s0 = inlined_call_operand.hbm [shape: f32[16,32], index: 0, kind: input, shape index: {}]   ;;  %s379_s1 = inlined_call_operand.hbm [shape: f32[32,32], index: 1, kind: input, shape index: {}]   ;;  %s380_s2 = inlined_call_operand.vmem [shape: f32[1,32], index: 2, kind: input, shape index: {}]   ;;  %s381_s3 = inlined_call_operand.hbm [shape: f32[16,32], index: 3, kind: input, shape index: {}]   ;;  %s382_s4 = inlined_call_operand.hbm [shape: f32[16,32], index: 4, kind: output, shape index: {}]  }
   0x1   :  { %10 = vsyncpa [#allocation7], 0 }
   0x2   :  { %11 = vsyncpa [#allocation5], 0  ;;  %s311_s15 = smov [#allocation6]   ;;  %s312_s17 = smov [#allocation3]  }
   0x3   :  { %s29_s16 = sshll.u32 %s311_s15, 4  ;;  %s17_s18 = sshll.u32 %s312_s17, 4  ;;  %s30_s16 = int_to_ptr.vmem [resolvable:$true] %s29_s16  ;;  %s18_s18 = int_to_ptr.vmem [resolvable:$true] %s17_s18 }
   0x4   :  { %s233_s19 = scalar_lea.vmem %s30_s16, 512  ;;  %p238_p1 = scmp.lt.s32.totalorder %s30_s16, %s30_s16 }
   0x5   :  { %p234_p0 = scmp.ne.s32.totalorder %s30_s16, %s233_s19  ;;  %p239_p2 = scmp.lt.s32.totalorder %s233_s19, %s233_s19 }
   0x7   :  { %p240_p3 = por %p239_p2, %p238_p1 }
   0x9   :  { %p241_p4 = pnand %p240_p3, %p234_p0 }
   0xb   :  { %244 = shalt.err (!%p241_p4)
}
   0xc   :  { %s313_s20 = smov 128   ;;  %s314_s21 = smov 8  }
   0xd   :  { %35 = dma.hbm_to_vmem [thread:$0]  %s379_s1, 512, %s30_s16, [#allocation7], %s313_s20, %s313_s20, %s314_s21  }
   0xe   :  { %s253_s24 = scalar_lea.vmem %s18_s18, 256  ;;  %p258_p6 = scmp.lt.s32.totalorder %s18_s18, %s18_s18 }
   0xf   :  { %p254_p5 = scmp.ne.s32.totalorder %s18_s18, %s253_s24  ;;  %p259_p7 = scmp.lt.s32.totalorder %s253_s24, %s253_s24 }
  0x11   :  { %p260_p8 = por %p259_p7, %p258_p6 }
  0x13   :  { %p261_p9 = pnand %p260_p8, %p254_p5 }
  0x15   :  { %264 = shalt.err (!%p261_p9)
}
  0x16   :  { %23 = dma.hbm_to_vmem [thread:$0]  %s378_s0, 256, %s18_s18, [#allocation4], %s313_s20, %s313_s20, %s314_s21  }
  0x17   :  { %s315_s27 = smov [#allocation8]  }
  0x18   :  { %s43_s28 = sshll.u32 %s315_s27, 4  ;;  %s44_s28 = int_to_ptr.vmem [resolvable:$true] %s43_s28 }
  0x19   :  { %s273_s29 = scalar_lea.vmem %s44_s28, 256  ;;  %p278_p11 = scmp.lt.s32.totalorder %s44_s28, %s44_s28 }
  0x1a   :  { %p274_p10 = scmp.ne.s32.totalorder %s44_s28, %s273_s29  ;;  %p279_p12 = scmp.lt.s32.totalorder %s273_s29, %s273_s29 }
  0x1c   :  { %p280_p13 = por %p279_p12, %p278_p11 }
  0x1e   :  { %p281_p0 = pnand %p280_p13, %p274_p10 }
  0x20   :  { %284 = shalt.err (!%p281_p0)
}
  0x21   :  { %49 = dma.hbm_to_vmem [thread:$0]  %s381_s3, 256, %s44_s28, [#allocation7], %s313_s20, %s313_s20, %s314_s21  }
  0x22   :  { %305 = dma.done.wait [#allocation4], 256  }
  0x23   :  { %306 = vsyncadd [#allocation4], 4294967040 }
  0x24   :  { %307 = dma.done.wait [#allocation7], 768  }
  0x25   :  { %308 = vsyncadd [#allocation7], 4294966528  ;;  %vm63_vm0 = vcmask 261120   ;;  %v316_v0 = vmov 0.0   ;;  %v73_v1 = vld [vmem:[#allocation6 + $0x18] sm:$0xff]  ;;  %v72_v2 = vld [vmem:[#allocation6 + $0x10] sm:$0xff] }
  0x26   :  { %65 = vst.msk [vmem:[#allocation2 + $0x8] sm:$0xff] %vm63_vm0, %v316_v0  ;;  %64 = vst.msk [vmem:[#allocation2] sm:$0xff] %vm63_vm0, %v316_v0  ;;  %207 = vmatprep.subr.mxu0 %v73_v1  ;;  %v68_v3 = vld [vmem:[#allocation3] sm:$0xff]  ;;  %v71_v4 = vld [vmem:[#allocation6 + $0x8] sm:$0xff]  ;;  %s317_s5 = smov [#allocation9]  }
  0x27   :  { %208 = vmatpush3.msra.mxu0 %v73_v1  ;;  %215 = vmatprep.mubr.msk.f32.mxu0 %vm63_vm0, %v68_v3  ;;  %v70_v5 = vld [vmem:[#allocation6] sm:$0xff]  ;;  %v69_v6 = vld [vmem:[#allocation3 + $0x8] sm:$0xff]  ;;  %v175_v15 = vld [vmem:[#allocation8 + $0x8] sm:$0xff]  ;;  %s185_s6 = sshll.u32 %s317_s5, 4  ;;  %s186_s6 = int_to_ptr.vmem [resolvable:$true] %s185_s6 }
  0x28   :  { %209 = vmatprep.subr.mxu0 %v72_v2  ;;  %v200_v13 = vld [vmem:[%s380_s2] ss:$0 sm:$0xff]  ;;  %s285_s7 = scalar_lea.vmem %s186_s6, 256  ;;  %p290_p2 = scmp.lt.s32.totalorder %s186_s6, %s186_s6 }
  0x29   :  { %210 = vmatpush3.msra.mxu0 %v72_v2  ;;  %v174_v18 = vld [vmem:[#allocation8] sm:$0xff]  ;;  %p286_p1 = scmp.ne.s32.totalorder %s186_s6, %s285_s7  ;;  %p291_p3 = scmp.lt.s32.totalorder %s285_s7, %s285_s7 }
  0x2a   :  { %211 = vmatprep.subr.mxu0 %v71_v4 }
  0x2b   :  { %212 = vmatpush3.msra.mxu0 %v71_v4  ;;  %p292_p4 = por %p291_p3, %p290_p2 }
  0x2c   :  { %213 = vmatprep.subr.mxu0 %v70_v5 }
  0x2d   :  { %214 = vmatpush3.msra.mxu0 %v70_v5  ;;  %v67_v7 = vld [vmem:[#allocation2 + $0x8] sm:$0xff]  ;;  %v66_v9 = vld [vmem:[#allocation2] sm:$0xff]  ;;  %p293_p5 = pnand %p292_p4, %p286_p1 }
  0x2e   :  { %216 = vmatmul.mubr.msk.f32.vlgmr.msra.gmra.mxu0 %vm63_vm0, %v69_v6 }
  0xee   :  { %v217_v8 = vpop.f32.mrf.mxu0 }
  0xef   :  { %v157_v10 = vadd.f32 %v217_v8, %v67_v7 }
  0xf0   :  { %v147_v11 = vpop.f32.mrf.mxu0 }
  0xf1   :  { %159 = vst.msk [vmem:[#allocation2 + $0x8] sm:$0xff] %vm63_vm0, %v157_v10  ;;  %v156_v12 = vadd.f32 %v147_v11, %v66_v9 }
  0xf3   :  { %158 = vst.msk [vmem:[#allocation2] sm:$0xff] %vm63_vm0, %v156_v12 }
  0xf8   :  { %v164_v14 = vld [vmem:[#allocation2 + $0x8] sm:$0xff] }
  0xf9   :  { %v173_v16 = vadd.f32 %v200_v13, %v164_v14 }
  0xfa   :  { %v163_v17 = vld [vmem:[#allocation2] sm:$0xff] }
  0xfb   :  { %v172_v19 = vadd.f32 %v200_v13, %v163_v17  ;;  %v177_v20 = vadd.f32 %v175_v15, %v173_v16 }
  0xfd   :  { %v176_v21 = vadd.f32 %v174_v18, %v172_v19  ;;  %179 = vst.msk [vmem:[#allocation9 + $0x8] sm:$0xff] %vm63_vm0, %v177_v20 }
  0xff   :  { %178 = vst.msk [vmem:[#allocation9] sm:$0xff] %vm63_vm0, %v176_v21 }
 0x100   :  { %296 = shalt.err (!%p293_p5)
}
 0x101   :  { %191 = dma.vmem_to_hbm [thread:$0]  %s186_s6, 256, %s382_s4, [#allocation5], %s313_s20, %s313_s20, %s314_s21  }
 0x102   :  { %309 = dma.done.wait [#allocation5], 256  }
 0x103   :  { %310 = vsyncadd [#allocation5], 4294967040 }
 0x104   :  { %195 = vsyncpa [#allocation4], 1 }
 0x105   :  { %196 = vsyncpa [#allocation7], 1 }
 0x106   :  { %197 = vsyncpa [#allocation5], 1 }

</bundles_post_ra>
